<compile_context>
chip_gen: v6e
topology: v6e:2x2x1
jax: 0.10.0
libtpu: 0.0.40
codegen_flags: <defaults>
</compile_context>

<pallas_src>
import functools

import jax
import jax.numpy as jnp
from jax.experimental import pallas as pl
from jax.experimental.pallas import tpu as pltpu

HIDDEN_LAYERS = 2
HIDDEN_SIZE = 256
LANE = 128


def _round_up(x, m):
    return ((x + m - 1) // m) * m


def _qfoo_kernel(x_ref, w1_ref, b1_ref, w2_ref, b2_ref, w3_ref, b3_ref, o_ref):
    # Layer 1: Linear(state_pad -> hidden) + ReLU.  bf16 MXU, f32 accumulate.
    h = jnp.dot(x_ref[...], w1_ref[...], preferred_element_type=jnp.float32)
    h = jnp.maximum(h + b1_ref[...], 0.0)                      # f32 VPU (v5e-safe)
    # Layer 2: Linear(hidden -> hidden) + ReLU.
    h = jnp.dot(h.astype(jnp.bfloat16), w2_ref[...],
                preferred_element_type=jnp.float32)
    h = jnp.maximum(h + b2_ref[...], 0.0)
    # Output layer: Linear(hidden -> action_pad), no activation (lane-dense N=128).
    out = jnp.dot(h.astype(jnp.bfloat16), w3_ref[...],
                  preferred_element_type=jnp.float32)
    o_ref[...] = (out + b3_ref[...]).astype(o_ref.dtype)


def init_qfoo_params(key, state_dim, action_dim,
                     hidden_size=HIDDEN_SIZE, hidden_layers=HIDDEN_LAYERS):
    """f32 params matching nn.Linear's U(-1/sqrt(fan_in), 1/sqrt(fan_in)).

    Weights stored [in, out]; biases stored [1, out].  hidden_layers is fixed
    at 2 (module default) -> 3 Linear layers.
    """
    assert hidden_layers == 2, "kernel specialized to the module default (2 hidden layers)"
    dims = [(state_dim, hidden_size), (hidden_size, hidden_size), (hidden_size, action_dim)]
    params = {}
    for i, (fan_in, fan_out) in enumerate(dims, start=1):
        key, kw, kb = jax.random.split(key, 3)
        bound = 1.0 / jnp.sqrt(jnp.float32(fan_in))
        params[f"w{i}"] = jax.random.uniform(
            kw, (fan_in, fan_out), jnp.float32, minval=-bound, maxval=bound)
        params[f"b{i}"] = jax.random.uniform(
            kb, (1, fan_out), jnp.float32, minval=-bound, maxval=bound)
    return params


def prepare_qfoo_params(params):
    """Pad to lane-dense shapes and cast weights to bf16 (done once, offline).

    w1: [state_dim, H]  -> [round128(state_dim), H]   (zero rows: no effect)
    w3: [H, action_dim] -> [H, round128(action_dim)]  (zero cols, sliced away)
    b3: [1, action_dim] -> [1, round128(action_dim)]
    Biases stay f32 (elementwise path); weights become bf16 (MXU-native).
    """
    w1, b1 = params["w1"], params["b1"]
    w2, b2 = params["w2"], params["b2"]
    w3, b3 = params["w3"], params["b3"]
    in_dim, hidden = w1.shape
    action_dim = w3.shape[1]
    in_pad = _round_up(in_dim, LANE)
    out_pad = _round_up(action_dim, LANE)

    w1p = jnp.zeros((in_pad, hidden), jnp.float32).at[:in_dim, :].set(w1)
    w3p = jnp.zeros((hidden, out_pad), jnp.float32).at[:, :action_dim].set(w3)
    b3p = jnp.zeros((1, out_pad), jnp.float32).at[:, :action_dim].set(b3)

    return {
        "w1": w1p.astype(jnp.bfloat16), "b1": b1.astype(jnp.float32),
        "w2": w2.astype(jnp.bfloat16), "b2": b2.astype(jnp.float32),
        "w3": w3p.astype(jnp.bfloat16), "b3": b3p.astype(jnp.float32),
    }


@functools.partial(jax.jit, static_argnames=("action_dim", "block_b"))
def qfoo_forward(x, prepared, action_dim, block_b=512):
    """x: [B, state_dim] float32.  prepared: output of prepare_qfoo_params."""
    w1, b1 = prepared["w1"], prepared["b1"]
    w2, b2 = prepared["w2"], prepared["b2"]
    w3, b3 = prepared["w3"], prepared["b3"]

    B, state_dim = x.shape
    in_pad = w1.shape[0]           # state_dim padded to multiple of 128
    hidden = w1.shape[1]
    out_pad = w3.shape[1]          # action_dim padded to multiple of 128

    # Batch tile: multiple of 8 sublanes, capped at block_b rows.
    tb = min(block_b, _round_up(B, 8))
    b_pad = _round_up(B, tb)
    nb = b_pad // tb

    # Lane-dense, bf16 input tile: pad features to 128 and batch to a tile multiple.
    x_pad = jnp.zeros((b_pad, in_pad), jnp.bfloat16)
    x_pad = x_pad.at[:B, :state_dim].set(x.astype(jnp.bfloat16))

    pinned = lambda shape: pl.BlockSpec(shape, lambda i: tuple(0 for _ in shape))

    out_padded = pl.pallas_call(
        _qfoo_kernel,
        out_shape=jax.ShapeDtypeStruct((b_pad, out_pad), jnp.float32),
        grid=(nb,),
        in_specs=[
            pl.BlockSpec((tb, in_pad), lambda i: (i, 0)),   # x tile, pipelined
            pinned((in_pad, hidden)), pinned((1, hidden)),  # w1, b1 (VMEM-resident)
            pinned((hidden, hidden)), pinned((1, hidden)),  # w2, b2
            pinned((hidden, out_pad)), pinned((1, out_pad)),  # w3, b3
        ],
        out_specs=pl.BlockSpec((tb, out_pad), lambda i: (i, 0)),
        compiler_params=pltpu.CompilerParams(
            dimension_semantics=("parallel",)),
    )(x_pad, w1, b1, w2, b2, w3, b3)

    return out_padded[:B, :action_dim]


def qfoo_reference(x, params):
    """Pure-JAX f32 reference of the same forward pass."""
    h = jnp.maximum(x @ params["w1"] + params["b1"], 0.0)
    h = jnp.maximum(h @ params["w2"] + params["b2"], 0.0)
    return h @ params["w3"] + params["b3"]


if __name__ == "__main__":
    # Lunar-lander-like shapes: state_dim=8, action_dim=4.
    key = jax.random.PRNGKey(0)
    key, kx1, kx2 = jax.random.split(key, 3)

    state_dim, action_dim = 8, 4
    params = init_qfoo_params(key, state_dim, action_dim)
    prepared = prepare_qfoo_params(params)

    # bf16 matmuls vs f32 reference -> loosened tolerance (intentional trade).
    TOL = dict(atol=3e-2, rtol=3e-2)

    # 1) Small batch (single grid step).
    batch = 8
    x = jax.random.normal(kx1, (batch, state_dim), jnp.float32)
    out = jax.block_until_ready(qfoo_forward(x, prepared, action_dim=action_dim))
    ref = qfoo_reference(x, params)
    assert out.shape == (batch, action_dim), out.shape
    assert jnp.allclose(out, ref, **TOL), "mismatch vs reference (small batch)"

    # 2) Larger, non-aligned batch exercising the pipelined/parallel batch grid
    #    (padding + multiple grid steps), still small enough for a quick check.
    batch2 = 300
    x2 = jax.random.normal(kx2, (batch2, state_dim), jnp.float32)
    out2 = jax.block_until_ready(
        qfoo_forward(x2, prepared, action_dim=action_dim, block_b=128))
    ref2 = qfoo_reference(x2, params)
    assert out2.shape == (batch2, action_dim), out2.shape
    assert jnp.allclose(out2, ref2, **TOL), "mismatch vs reference (batched grid)"

    print("KERNEL_OK")
</pallas_src>

<mosaic_0001>
module attributes {stable_mosaic.version = 11 : i64} {
  func.func @_qfoo_kernel(%arg0: i32, %arg1: memref<8x128xbf16, #tpu.memory_space<vmem>>, %arg2: memref<128x256xbf16, #tpu.memory_space<vmem>>, %arg3: memref<1x256xf32, #tpu.memory_space<vmem>>, %arg4: memref<256x256xbf16, #tpu.memory_space<vmem>>, %arg5: memref<1x256xf32, #tpu.memory_space<vmem>>, %arg6: memref<256x128xbf16, #tpu.memory_space<vmem>>, %arg7: memref<1x128xf32, #tpu.memory_space<vmem>>, %arg8: memref<8x128xf32, #tpu.memory_space<vmem>>) attributes {dimension_semantics = [#tpu.dimension_semantics<parallel>], iteration_bounds = array<i64: 1>, scalar_prefetch = 0 : i64, scratch_operands = 0 : i64, tpu.core_type = #tpu.core_type<tc>, window_params = [{transform_indices = @transform_0, window_bounds = array<i64: 8, 128>}, {pipeline_mode = #tpu.pipeline_mode<synchronous>, transform_indices = @transform_1, window_bounds = array<i64: 128, 256>}, {pipeline_mode = #tpu.pipeline_mode<synchronous>, transform_indices = @transform_2, window_bounds = array<i64: 1, 256>}, {pipeline_mode = #tpu.pipeline_mode<synchronous>, transform_indices = @transform_3, window_bounds = array<i64: 256, 256>}, {pipeline_mode = #tpu.pipeline_mode<synchronous>, transform_indices = @transform_4, window_bounds = array<i64: 1, 256>}, {pipeline_mode = #tpu.pipeline_mode<synchronous>, transform_indices = @transform_5, window_bounds = array<i64: 256, 128>}, {pipeline_mode = #tpu.pipeline_mode<synchronous>, transform_indices = @transform_6, window_bounds = array<i64: 1, 128>}, {transform_indices = @transform_7, window_bounds = array<i64: 8, 128>}]} {
    %c0 = arith.constant 0 : index
    %c0_0 = arith.constant 0 : index
    %0 = vector.load %arg1[%c0, %c0_0] : memref<8x128xbf16, #tpu.memory_space<vmem>>, vector<8x128xbf16>
    %c0_1 = arith.constant 0 : index
    %c0_2 = arith.constant 0 : index
    %1 = vector.load %arg2[%c0_1, %c0_2] : memref<128x256xbf16, #tpu.memory_space<vmem>>, vector<128x256xbf16>
    %cst = arith.constant dense<0.000000e+00> : vector<8x256xf32>
    %2 = tpu.matmul %0, %1, %cst {dimension_numbers = #tpu.dot_dimension_numbers<[1], [0], [0], [1], [0, 0, 1, 1], [], []>} : vector<8x128xbf16>, vector<128x256xbf16>, vector<8x256xf32> -> vector<8x256xf32>
    %c0_3 = arith.constant 0 : index
    %c0_4 = arith.constant 0 : index
    %3 = vector.load %arg3[%c0_3, %c0_4] : memref<1x256xf32, #tpu.memory_space<vmem>>, vector<1x256xf32>
    %4 = vector.broadcast %3 : vector<1x256xf32> to vector<8x256xf32>
    %5 = arith.addf %2, %4 : vector<8x256xf32>
    %cst_5 = arith.constant 0.000000e+00 : f32
    %6 = vector.broadcast %cst_5 : f32 to vector<8x256xf32>
    %7 = arith.maximumf %5, %6 : vector<8x256xf32>
    %8 = arith.truncf %7 : vector<8x256xf32> to vector<8x256xbf16>
    %c0_6 = arith.constant 0 : index
    %c0_7 = arith.constant 0 : index
    %9 = vector.load %arg4[%c0_6, %c0_7] : memref<256x256xbf16, #tpu.memory_space<vmem>>, vector<256x256xbf16>
    %cst_8 = arith.constant dense<0.000000e+00> : vector<8x256xf32>
    %10 = tpu.matmul %8, %9, %cst_8 {dimension_numbers = #tpu.dot_dimension_numbers<[1], [0], [0], [1], [0, 0, 1, 1], [], []>} : vector<8x256xbf16>, vector<256x256xbf16>, vector<8x256xf32> -> vector<8x256xf32>
    %c0_9 = arith.constant 0 : index
    %c0_10 = arith.constant 0 : index
    %11 = vector.load %arg5[%c0_9, %c0_10] : memref<1x256xf32, #tpu.memory_space<vmem>>, vector<1x256xf32>
    %12 = vector.broadcast %11 : vector<1x256xf32> to vector<8x256xf32>
    %13 = arith.addf %10, %12 : vector<8x256xf32>
    %cst_11 = arith.constant 0.000000e+00 : f32
    %14 = vector.broadcast %cst_11 : f32 to vector<8x256xf32>
    %15 = arith.maximumf %13, %14 : vector<8x256xf32>
    %16 = arith.truncf %15 : vector<8x256xf32> to vector<8x256xbf16>
    %c0_12 = arith.constant 0 : index
    %c0_13 = arith.constant 0 : index
    %17 = vector.load %arg6[%c0_12, %c0_13] : memref<256x128xbf16, #tpu.memory_space<vmem>>, vector<256x128xbf16>
    %cst_14 = arith.constant dense<0.000000e+00> : vector<8x128xf32>
    %18 = tpu.matmul %16, %17, %cst_14 {dimension_numbers = #tpu.dot_dimension_numbers<[1], [0], [0], [1], [0, 0, 1, 1], [], []>} : vector<8x256xbf16>, vector<256x128xbf16>, vector<8x128xf32> -> vector<8x128xf32>
    %c0_15 = arith.constant 0 : index
    %c0_16 = arith.constant 0 : index
    %19 = vector.load %arg7[%c0_15, %c0_16] : memref<1x128xf32, #tpu.memory_space<vmem>>, vector<1x128xf32>
    %20 = vector.broadcast %19 : vector<1x128xf32> to vector<8x128xf32>
    %21 = arith.addf %18, %20 : vector<8x128xf32>
    %c0_17 = arith.constant 0 : index
    %c0_18 = arith.constant 0 : index
    %22 = vector.load %arg8[%c0_17, %c0_18] : memref<8x128xf32, #tpu.memory_space<vmem>>, vector<8x128xf32>
    tpu.vector_store %arg8[%c0_17, %c0_18], %21 {strides = array<i32>} : memref<8x128xf32, #tpu.memory_space<vmem>>, vector<8x128xf32>,
    return
  }
  func.func @transform_0(%arg0: i32) -> (i32, i32) {
    %c0_i32 = arith.constant 0 : i32
    %c0_i32_0 = arith.constant 0 : i32
    return %arg0, %c0_i32 : i32, i32
  }
  func.func @transform_1(%arg0: i32) -> (i32, i32) {
    %c0_i32 = arith.constant 0 : i32
    %c0_i32_0 = arith.constant 0 : i32
    %c0_i32_1 = arith.constant 0 : i32
    return %c0_i32, %c0_i32_0 : i32, i32
  }
  func.func @transform_2(%arg0: i32) -> (i32, i32) {
    %c0_i32 = arith.constant 0 : i32
    %c0_i32_0 = arith.constant 0 : i32
    %c0_i32_1 = arith.constant 0 : i32
    return %c0_i32, %c0_i32_0 : i32, i32
  }
  func.func @transform_3(%arg0: i32) -> (i32, i32) {
    %c0_i32 = arith.constant 0 : i32
    %c0_i32_0 = arith.constant 0 : i32
    %c0_i32_1 = arith.constant 0 : i32
    return %c0_i32, %c0_i32_0 : i32, i32
  }
  func.func @transform_4(%arg0: i32) -> (i32, i32) {
    %c0_i32 = arith.constant 0 : i32
    %c0_i32_0 = arith.constant 0 : i32
    %c0_i32_1 = arith.constant 0 : i32
    return %c0_i32, %c0_i32_0 : i32, i32
  }
  func.func @transform_5(%arg0: i32) -> (i32, i32) {
    %c0_i32 = arith.constant 0 : i32
    %c0_i32_0 = arith.constant 0 : i32
    %c0_i32_1 = arith.constant 0 : i32
    return %c0_i32, %c0_i32_0 : i32, i32
  }
  func.func @transform_6(%arg0: i32) -> (i32, i32) {
    %c0_i32 = arith.constant 0 : i32
    %c0_i32_0 = arith.constant 0 : i32
    %c0_i32_1 = arith.constant 0 : i32
    return %c0_i32, %c0_i32_0 : i32, i32
  }
  func.func @transform_7(%arg0: i32) -> (i32, i32) {
    %c0_i32 = arith.constant 0 : i32
    %c0_i32_0 = arith.constant 0 : i32
    return %arg0, %c0_i32 : i32, i32
  }
}

</mosaic_0001>

<bundles_post_ra>
// kernel: qfoo_forward.1
= control target key start
LH: loop header
LB: loop body
LE: loop exit
PB: predicated region body
PF: predicated region fallthrough
CT: control target
= control target key end

     0   :  { %12 = vsyncpa [#allocation3], 0  ;;  %s972_s0 = inlined_call_operand.vmem [shape: bf16[8,128], index: 0, kind: input, shape index: {}]   ;;  %s973_s1 = inlined_call_operand.hbm [shape: bf16[128,256], index: 1, kind: input, shape index: {}]   ;;  %s974_s2 = inlined_call_operand.vmem [shape: f32[1,256], index: 2, kind: input, shape index: {}]   ;;  %s975_s3 = inlined_call_operand.hbm [shape: bf16[256,256], index: 3, kind: input, shape index: {}]   ;;  %s976_s4 = inlined_call_operand.vmem [shape: f32[1,256], index: 4, kind: input, shape index: {}]   ;;  %s977_s5 = inlined_call_operand.hbm [shape: bf16[256,128], index: 5, kind: input, shape index: {}]   ;;  %s978_s6 = inlined_call_operand.vmem [shape: f32[1,128], index: 6, kind: input, shape index: {}]   ;;  %s979_s7 = inlined_call_operand.vmem [shape: f32[8,128], index: 7, kind: output, shape index: {}]  }
   0x1   :  { %13 = vsyncpa [#allocation5], 0  ;;  %s900_s24 = smov [#allocation4]   ;;  %s901_s26 = smov [#allocation2]  }
   0x2   :  { %s35_s25 = sshll.u32 %s900_s24, 4  ;;  %s21_s27 = sshll.u32 %s901_s26, 4  ;;  %s36_s25 = int_to_ptr.vmem [resolvable:$true] %s35_s25  ;;  %s22_s27 = int_to_ptr.vmem [resolvable:$true] %s21_s27 }
   0x3   :  { %s844_s28 = scalar_lea.vmem %s36_s25, 4096  ;;  %p849_p1 = scmp.lt.s32.totalorder %s36_s25, %s36_s25 }
   0x4   :  { %p845_p0 = scmp.ne.s32.totalorder %s36_s25, %s844_s28  ;;  %p850_p2 = scmp.lt.s32.totalorder %s844_s28, %s844_s28 }
   0x6   :  { %p851_p3 = por %p850_p2, %p849_p1 }
   0x8   :  { %p852_p4 = pnand %p851_p3, %p845_p0 }
   0xa   :  { %855 = shalt.err (!%p852_p4)
}
   0xb   :  { %s902_s29 = smov 128   ;;  %s903_s30 = smov 8  }
   0xc   :  { %41 = dma.hbm_to_vmem [thread:$0]  %s975_s3, 4096, %s36_s25, [#allocation5], %s902_s29, %s902_s29, %s903_s30  }
   0xd   :  { %s864_s10 = scalar_lea.vmem %s22_s27, 2048  ;;  %p869_p6 = scmp.lt.s32.totalorder %s22_s27, %s22_s27 }
   0xe   :  { %p865_p5 = scmp.ne.s32.totalorder %s22_s27, %s864_s10  ;;  %p870_p7 = scmp.lt.s32.totalorder %s864_s10, %s864_s10 }
  0x10   :  { %p871_p8 = por %p870_p7, %p869_p6 }
  0x12   :  { %p872_p9 = pnand %p871_p8, %p865_p5 }
  0x14   :  { %875 = shalt.err (!%p872_p9)
}
  0x15   :  { %27 = dma.hbm_to_vmem [thread:$0]  %s973_s1, 2048, %s22_s27, [#allocation3], %s902_s29, %s902_s29, %s903_s30  }
  0x16   :  { %s904_s13 = smov [#allocation6]  }
  0x17   :  { %s49_s14 = sshll.u32 %s904_s13, 4  ;;  %s50_s14 = int_to_ptr.vmem [resolvable:$true] %s49_s14 }
  0x18   :  { %s884_s15 = scalar_lea.vmem %s50_s14, 2048  ;;  %p889_p11 = scmp.lt.s32.totalorder %s50_s14, %s50_s14 }
  0x19   :  { %p885_p10 = scmp.ne.s32.totalorder %s50_s14, %s884_s15  ;;  %p890_p12 = scmp.lt.s32.totalorder %s884_s15, %s884_s15 }
  0x1b   :  { %p891_p13 = por %p890_p12, %p889_p11 }
  0x1d   :  { %p892_p0 = pnand %p891_p13, %p885_p10 }
  0x1f   :  { %895 = shalt.err (!%p892_p0)
}
  0x20   :  { %s905_s3 = smov 64   ;;  %s906_s16 = smov 4  }
  0x21   :  { %55 = dma.hbm_to_vmem [thread:$0]  %s977_s5, 2048, %s50_s14, [#allocation5], %s905_s3, %s905_s3, %s906_s16  }
  0x22   :  { %896 = dma.done.wait [#allocation3], 2048  }
  0x23   :  { %897 = vsyncadd [#allocation3], 4294965248 }
  0x24   :  { %898 = dma.done.wait [#allocation5], 6144  }
  0x25   :  { %899 = vsyncadd [#allocation5], 4294961152  ;;  %v907_v0 = vmov 0   ;;  %v748_v1 = vld [vmem:[#allocation2 + $0x74] ss:$8 sps:$4 sm:$0xff]   ;;  %v824_v54 = vld [vmem:[#allocation6 + $0x68] sm:$0xff]   ;;  %v87_v62 = vlaneseq }
  0x26   :  { %209 = vmatprep.mubr.bf16.mxu0 %v907_v0  ;;  %v750_v2 = vld [vmem:[#allocation2 + $0x70] ss:$8 sps:$4 sm:$0xff]   ;;  %177 = vmatprep.subr.bf16.mxu0 %v748_v1  ;;  %v751_v3 = vld [vmem:[#allocation2 + $0x64] ss:$8 sps:$4 sm:$0xff]   ;;  %v753_v4 = vld [vmem:[#allocation2 + $0x60] ss:$8 sps:$4 sm:$0xff]  }
  0x27   :  { %178 = vmatpush1.bf16.msra.mxu0 %v750_v2  ;;  %v754_v5 = vld [vmem:[#allocation2 + $0x54] ss:$8 sps:$4 sm:$0xff]   ;;  %v756_v6 = vld [vmem:[#allocation2 + $0x50] ss:$8 sps:$4 sm:$0xff]   ;;  %v757_v7 = vld [vmem:[#allocation2 + $0x44] ss:$8 sps:$4 sm:$0xff]  }
  0x28   :  { %179 = vmatprep.subr.bf16.mxu0 %v751_v3  ;;  %v759_v8 = vld [vmem:[#allocation2 + $0x40] ss:$8 sps:$4 sm:$0xff]   ;;  %v760_v9 = vld [vmem:[#allocation2 + $0x34] ss:$8 sps:$4 sm:$0xff]   ;;  %v774_v11 = vld [vmem:[#allocation4 + $0x70] ss:$8 sps:$4 sm:$0xff]  }
  0x29   :  { %v772_v10 = vld [vmem:[#allocation4 + $0x74] ss:$8 sps:$4 sm:$0xff]   ;;  %v775_v12 = vld [vmem:[#allocation4 + $0x64] ss:$8 sps:$4 sm:$0xff]   ;;  %v762_v13 = vld [vmem:[#allocation2 + $0x30] ss:$8 sps:$4 sm:$0xff]  }
  0x2a   :  { %426 = vmatprep.subr.bf16.mxu1 %v772_v10  ;;  %v777_v14 = vld [vmem:[#allocation4 + $0x60] ss:$8 sps:$4 sm:$0xff]   ;;  %v778_v15 = vld [vmem:[#allocation4 + $0x54] ss:$8 sps:$4 sm:$0xff]   ;;  %v763_v16 = vld [vmem:[#allocation2 + $0x24] ss:$8 sps:$4 sm:$0xff]  }
  0x2b   :  { %180 = vmatpush1.bf16.msra.mxu0 %v753_v4  ;;  %427 = vmatpush1.bf16.msra.mxu1 %v774_v11  ;;  %v765_v17 = vld [vmem:[#allocation2 + $0x20] ss:$8 sps:$4 sm:$0xff]   ;;  %v780_v18 = vld [vmem:[#allocation4 + $0x50] ss:$8 sps:$4 sm:$0xff]   ;;  %v781_v19 = vld [vmem:[#allocation4 + $0x44] ss:$8 sps:$4 sm:$0xff]  }
  0x2c   :  { %181 = vmatprep.subr.bf16.mxu0 %v754_v5  ;;  %428 = vmatprep.subr.bf16.mxu1 %v775_v12  ;;  %v766_v20 = vld [vmem:[#allocation2 + $0x14] ss:$8 sps:$4 sm:$0xff]   ;;  %v768_v21 = vld [vmem:[#allocation2 + $0x10] ss:$8 sps:$4 sm:$0xff]   ;;  %v783_v22 = vld [vmem:[#allocation4 + $0x40] ss:$8 sps:$4 sm:$0xff]  }
  0x2d   :  { %v784_v23 = vld [vmem:[#allocation4 + $0x34] ss:$8 sps:$4 sm:$0xff]   ;;  %v769_v24 = vld [vmem:[#allocation2 + $0x4] ss:$8 sps:$4 sm:$0xff]   ;;  %v771_v25 = vld [vmem:[#allocation2] ss:$8 sps:$4 sm:$0xff]  }
  0x2e   :  { %v786_v26 = vld [vmem:[#allocation4 + $0x30] ss:$8 sps:$4 sm:$0xff]   ;;  %v787_v27 = vld [vmem:[#allocation4 + $0x24] ss:$8 sps:$4 sm:$0xff]   ;;  %v68_v28 = vld [vmem:[%s972_s0] sm:$0xf] }
  0x2f   :  { %182 = vmatpush1.bf16.msra.mxu0 %v756_v6  ;;  %429 = vmatpush1.bf16.msra.mxu1 %v777_v14  ;;  %v789_v29 = vld [vmem:[#allocation4 + $0x20] ss:$8 sps:$4 sm:$0xff]   ;;  %v790_v30 = vld [vmem:[#allocation4 + $0x14] ss:$8 sps:$4 sm:$0xff]   ;;  %v792_v31 = vld [vmem:[#allocation4 + $0x10] ss:$8 sps:$4 sm:$0xff]  }
  0x30   :  { %183 = vmatprep.subr.bf16.mxu0 %v757_v7  ;;  %430 = vmatprep.subr.bf16.mxu1 %v778_v15  ;;  %v793_v32 = vld [vmem:[#allocation4 + $0x4] ss:$8 sps:$4 sm:$0xff]   ;;  %v795_v33 = vld [vmem:[#allocation4] ss:$8 sps:$4 sm:$0xff]   ;;  %v796_v34 = vld [vmem:[#allocation4 + $0xf4] ss:$8 sps:$4 sm:$0xff]  }
  0x31   :  { %v798_v35 = vld [vmem:[#allocation4 + $0xf0] ss:$8 sps:$4 sm:$0xff]   ;;  %v799_v36 = vld [vmem:[#allocation4 + $0xe4] ss:$8 sps:$4 sm:$0xff]   ;;  %v801_v37 = vld [vmem:[#allocation4 + $0xe0] ss:$8 sps:$4 sm:$0xff]  }
  0x32   :  { %v802_v38 = vld [vmem:[#allocation4 + $0xd4] ss:$8 sps:$4 sm:$0xff]   ;;  %v804_v39 = vld [vmem:[#allocation4 + $0xd0] ss:$8 sps:$4 sm:$0xff]   ;;  %v805_v40 = vld [vmem:[#allocation4 + $0xc4] ss:$8 sps:$4 sm:$0xff]  }
  0x33   :  { %184 = vmatpush1.bf16.msra.mxu0 %v759_v8  ;;  %431 = vmatpush1.bf16.msra.mxu1 %v780_v18  ;;  %v807_v41 = vld [vmem:[#allocation4 + $0xc0] ss:$8 sps:$4 sm:$0xff]   ;;  %v808_v42 = vld [vmem:[#allocation4 + $0xb4] ss:$8 sps:$4 sm:$0xff]   ;;  %v810_v43 = vld [vmem:[#allocation4 + $0xb0] ss:$8 sps:$4 sm:$0xff]  }
  0x34   :  { %185 = vmatprep.subr.bf16.mxu0 %v760_v9  ;;  %432 = vmatprep.subr.bf16.mxu1 %v781_v19  ;;  %v811_v44 = vld [vmem:[#allocation4 + $0xa4] ss:$8 sps:$4 sm:$0xff]   ;;  %v813_v45 = vld [vmem:[#allocation4 + $0xa0] ss:$8 sps:$4 sm:$0xff]   ;;  %v814_v46 = vld [vmem:[#allocation4 + $0x94] ss:$8 sps:$4 sm:$0xff]  }
  0x35   :  { %v816_v47 = vld [vmem:[#allocation4 + $0x90] ss:$8 sps:$4 sm:$0xff]   ;;  %v817_v48 = vld [vmem:[#allocation4 + $0x84] ss:$8 sps:$4 sm:$0xff]   ;;  %v819_v49 = vld [vmem:[#allocation4 + $0x80] ss:$8 sps:$4 sm:$0xff]  }
  0x36   :  { %v820_v50 = vld [vmem:[#allocation6 + $0x78] sm:$0xff]   ;;  %v822_v52 = vld [vmem:[#allocation6 + $0x70] sm:$0xff]   ;;  %v825_v55 = vld [vmem:[#allocation6 + $0x28] sm:$0xff]   ;;  %v88_v63 = vshrl.u32 %v87_v62, 7 }
  0x37   :  { %186 = vmatpush1.bf16.msra.mxu0 %v762_v13  ;;  %433 = vmatpush1.bf16.msra.mxu1 %v783_v22  ;;  %v821_v51 = vld [vmem:[#allocation6 + $0x38] sm:$0xff]   ;;  %v823_v53 = vld [vmem:[#allocation6 + $0x30] sm:$0xff]   ;;  %v826_v56 = vld [vmem:[#allocation6 + $0x60] sm:$0xff]  }
  0x38   :  { %187 = vmatprep.subr.bf16.mxu0 %v763_v16  ;;  %434 = vmatprep.subr.bf16.mxu1 %v784_v23  ;;  %v827_v57 = vld [vmem:[#allocation6 + $0x20] sm:$0xff]   ;;  %v828_v58 = vld [vmem:[#allocation6 + $0x58] sm:$0xff]   ;;  %v830_v60 = vld [vmem:[#allocation6 + $0x50] sm:$0xff]   ;;  %v89_v0 = vsub.s32 0, %v88_v63  ;;  %v93_v2 = vsub.s32 1, %v88_v63 }
  0x39   :  { %v829_v59 = vld [vmem:[#allocation6 + $0x18] sm:$0xff]   ;;  %v831_v61 = vld [vmem:[#allocation6 + $0x10] sm:$0xff]   ;;  %v85_v1 = vld [vmem:[%s974_s2] sm:$0x3] }
  0x3a   :  { %v90_v3 = vrot.slane %v85_v1, %v89_v0  ;;  %v94_v4 = vrot.slane %v85_v1, %v93_v2  ;;  %v832_v15 = vld [vmem:[#allocation6 + $0x48] sm:$0xff]   ;;  %v835_v18 = vld [vmem:[#allocation6] sm:$0xff]  }
  0x3b   :  { %188 = vmatpush1.bf16.msra.mxu0 %v765_v17  ;;  %435 = vmatpush1.bf16.msra.mxu1 %v786_v26  ;;  %v833_v16 = vld [vmem:[#allocation6 + $0x8] sm:$0xff]   ;;  %v834_v17 = vld [vmem:[#allocation6 + $0x40] sm:$0xff]  }
  0x3c   :  { %189 = vmatprep.subr.bf16.mxu0 %v766_v20  ;;  %436 = vmatprep.subr.bf16.mxu1 %v787_v27  ;;  %v254_v19 = vld [vmem:[%s976_s4] sm:$0x3] }
  0x3d   :  { %v259_v20 = vrot.slane %v254_v19, %v89_v0 }
  0x3f   :  { %190 = vmatpush1.bf16.msra.mxu0 %v768_v21  ;;  %437 = vmatpush1.bf16.msra.mxu1 %v789_v29  ;;  %v263_v21 = vrot.slane %v254_v19, %v93_v2 }
  0x40   :  { %191 = vmatprep.subr.bf16.mxu0 %v769_v24  ;;  %438 = vmatprep.subr.bf16.mxu1 %v790_v30 }
  0x43   :  { %192 = vmatpush1.bf16.msra.mxu0 %v771_v25  ;;  %439 = vmatpush1.bf16.msra.mxu1 %v792_v31 }
  0x44   :  { %440 = vmatprep.subr.bf16.mxu1 %v793_v32  ;;  %718 = vmatprep.subr.bf16.mxu0 %v820_v50 }
  0x46   :  { %210 = vmatmul.mubr.bf16.vlgmr.msra.gmra.mxu0 %v68_v28 }
  0x47   :  { %441 = vmatpush1.bf16.msra.mxu1 %v795_v33  ;;  %719 = vmatpush3.bf16.msra.mxu0 %v821_v51  ;;  %v701_v33 = vld [vmem:[%s978_s6] ss:$0 sm:$0xff] }
  0x48   :  { %442 = vmatprep.subr.bf16.mxu1 %v796_v34  ;;  %720 = vmatprep.subr.bf16.mxu0 %v822_v52 }
  0x4b   :  { %443 = vmatpush2.bf16.msra.mxu1 %v798_v35  ;;  %721 = vmatpush3.bf16.msra.mxu0 %v823_v53 }
  0x4c   :  { %444 = vmatprep.subr.bf16.mxu1 %v799_v36  ;;  %722 = vmatprep.subr.bf16.mxu0 %v824_v54 }
  0x4f   :  { %445 = vmatpush2.bf16.msra.mxu1 %v801_v37  ;;  %723 = vmatpush3.bf16.msra.mxu0 %v825_v55 }
  0x50   :  { %446 = vmatprep.subr.bf16.mxu1 %v802_v38  ;;  %724 = vmatprep.subr.bf16.mxu0 %v826_v56 }
  0x53   :  { %447 = vmatpush2.bf16.msra.mxu1 %v804_v39  ;;  %725 = vmatpush3.bf16.msra.mxu0 %v827_v57 }
  0x54   :  { %448 = vmatprep.subr.bf16.mxu1 %v805_v40  ;;  %726 = vmatprep.subr.bf16.mxu0 %v828_v58 }
  0x57   :  { %449 = vmatpush2.bf16.msra.mxu1 %v807_v41  ;;  %727 = vmatpush3.bf16.msra.mxu0 %v829_v59 }
  0x58   :  { %450 = vmatprep.subr.bf16.mxu1 %v808_v42  ;;  %728 = vmatprep.subr.bf16.mxu0 %v830_v60 }
  0x5b   :  { %451 = vmatpush2.bf16.msra.mxu1 %v810_v43  ;;  %729 = vmatpush3.bf16.msra.mxu0 %v831_v61 }
  0x5c   :  { %452 = vmatprep.subr.bf16.mxu1 %v811_v44  ;;  %730 = vmatprep.subr.bf16.mxu0 %v832_v15 }
  0x5f   :  { %453 = vmatpush2.bf16.msra.mxu1 %v813_v45  ;;  %731 = vmatpush3.bf16.msra.mxu0 %v833_v16 }
  0x60   :  { %454 = vmatprep.subr.bf16.mxu1 %v814_v46  ;;  %732 = vmatprep.subr.bf16.mxu0 %v834_v17 }
  0x63   :  { %455 = vmatpush2.bf16.msra.mxu1 %v816_v47  ;;  %733 = vmatpush3.bf16.msra.mxu0 %v835_v18 }
  0x64   :  { %456 = vmatprep.subr.bf16.mxu1 %v817_v48 }
  0x67   :  { %457 = vmatpush2.bf16.msra.mxu1 %v819_v49 }
 0x106   :  { %v211_v5 = vpop.f32.mrf.mxu0 }
 0x107   :  { %v212_v6 = vadd.f32 %v211_v5, %v90_v3 }
 0x108   :  { %v213_v7 = vpop.f32.mrf.mxu0 }
 0x109   :  { %v214_v8 = vadd.f32 %v213_v7, %v94_v4  ;;  %v218_v9 = vmax.f32 %v212_v6, 0.0 }
 0x10a   :  { %v215_v10 = vpop.f32.mrf.mxu0 }
 0x10b   :  { %v219_v11 = vmax.f32 %v214_v8, 0.0  ;;  %v220_v14 = vpack.c.bf16 %v218_v9, %v218_v9 }
 0x10c   :  { %v216_v12 = vpop.f32.mrf.mxu0 }
 0x10d   :  { %v221_v13 = vpack.c.bf16 %v219_v11, %v219_v11 }
 0x10f   :  { %458 = vmatprep.mubr.bf16.mxu1 %v221_v13 }
 0x110   :  { %459 = vmatmul.mubr.bf16.vlgmr.msra.gmra.mxu1 %v220_v14 }
 0x1d0   :  { %v460_v22 = vpop.f32.mrf.mxu1 }
 0x1d1   :  { %v461_v23 = vadd.f32 %v460_v22, %v259_v20 }
 0x1d2   :  { %v462_v24 = vpop.f32.mrf.mxu1 }
 0x1d3   :  { %v463_v25 = vadd.f32 %v462_v24, %v263_v21  ;;  %v467_v26 = vmax.f32 %v461_v23, 0.0 }
 0x1d4   :  { %v464_v27 = vpop.f32.mrf.mxu1 }
 0x1d5   :  { %v468_v28 = vmax.f32 %v463_v25, 0.0  ;;  %v469_v31 = vpack.c.bf16 %v467_v26, %v467_v26 }
 0x1d6   :  { %v465_v29 = vpop.f32.mrf.mxu1 }
 0x1d7   :  { %v470_v30 = vpack.c.bf16 %v468_v28, %v468_v28 }
 0x1d9   :  { %638 = vmatprep.mubr.bf16.mxu0 %v470_v30 }
 0x1da   :  { %639 = vmatmul.mubr.bf16.vlgmr.msra.gmra.mxu0 %v469_v31 }
 0x29a   :  { %v734_v32 = vpop.f32.mrf.mxu0 }
 0x29c   :  { %v735_v34 = vpop.f32.mrf.mxu0 }
 0x29d   :  { %v736_v35 = vadd.f32 %v735_v34, %v734_v32 }
 0x29e   :  { %v737_v36 = vpop.f32.mrf.mxu0 }
 0x29f   :  { %v641_v37 = vadd.f32 %v736_v35, %v701_v33 }
 0x2a0   :  { %v738_v38 = vpop.f32.mrf.mxu0 }
 0x2a1   :  { %646 = vst [vmem:[%s979_s7] sm:$0xff] %v641_v37 }
 0x2a2   :  { %651 = vsyncpa [#allocation3], 1 }
 0x2a3   :  { %652 = vsyncpa [#allocation5], 1 }

</bundles_post_ra>
